<compile_context>
chip_gen: v7x
topology: tpu7x:2x2x1
jax: 0.10.0
libtpu: 0.0.40
codegen_flags: <defaults>
</compile_context>

<pallas_src>
import functools

import jax
import jax.numpy as jnp
from jax import lax
from jax.experimental import pallas as pl
from jax.experimental.pallas import tpu as pltpu

LAMBDA_DIVERSITY = 0.1
LAMBDA_UNCERTAINTY = 0.05
EPS = 1e-8  # used by the PyTorch-mirroring reference


def _composite_loss_kernel(ens_ref, ind_ref, tgt_ref, out_ref, *, valid_rows):
    """One batch tile -> per-tile partial sums (fully parallel grid).

    out_ref block (1, 8, 128); row 0 lanes 0..2 hold
      [ce_sum, sum_m <q_m, log q_m>, <sum_m q_m, sum_m log q_m>]
    The wrapper reduces over tiles and finalizes the means / KL identity.
    """
    i = pl.program_id(0)
    M, TB, C = ind_ref.shape

    # Ragged-tail row mask (last tile may overhang the batch; overhang rows
    # contain undefined VMEM data and must be sanitized before exp/log).
    row_ids = i * TB + lax.broadcasted_iota(jnp.int32, (TB, 1), 0)
    valid_b = row_ids < valid_rows                                    # (TB,1) bool
    valid = valid_b.astype(jnp.float32)

    # ---------------- Cross-entropy: per-row logsumexp(z) - z[target] --------
    z = jnp.where(valid_b, ens_ref[...].astype(jnp.float32), 0.0)    # (TB, C)
    zmax = jnp.max(z, axis=-1, keepdims=True)
    lse = zmax + jnp.log(jnp.sum(jnp.exp(z - zmax), axis=-1, keepdims=True))
    tgt = tgt_ref[...]                                                # (TB,1) int32
    class_ids = lax.broadcasted_iota(jnp.int32, (TB, C), 1)
    z_t = jnp.sum(jnp.where(class_ids == tgt, z, 0.0), axis=-1, keepdims=True)
    ce_p = jnp.sum(valid * (lse - z_t))

    # ---------------- Diversity: O(M) form of the pairwise KL sum ------------
    # sum_{m!=m'} KL(q_m||q_m') = M*sum_m <q_m,logq_m> - <sum_m q_m, sum_m logq_m>
    # One exp per element; one log + one reciprocal per row (EUP-bound saving).
    if M > 1:
        def member_body(m, carry):
            qsum, ssum, qlogq_row = carry
            il = jnp.where(valid_b, ind_ref[m].astype(jnp.float32), 0.0)
            zi = il - jnp.max(il, axis=-1, keepdims=True)
            ei = jnp.exp(zi)                                          # EUP: TB*C
            denom = jnp.sum(ei, axis=-1, keepdims=True)               # (TB, 1)
            q = ei * pl.reciprocal(denom)                             # EUP: TB rows
            logq = zi - jnp.log(denom)                                # EUP: TB rows
            qlogq_row = qlogq_row + jnp.sum(q * logq, axis=-1, keepdims=True)
            return qsum + q, ssum + logq, qlogq_row

        init = (jnp.zeros((TB, C), jnp.float32),
                jnp.zeros((TB, C), jnp.float32),
                jnp.zeros((TB, 1), jnp.float32))
        qsum, ssum, qlogq_row = lax.fori_loop(0, M, member_body, init,
                                              unroll=(M <= 8))
        qlogq_p = jnp.sum(valid * qlogq_row)
        cross_p = jnp.sum(valid * (qsum * ssum))
    else:
        qlogq_p = jnp.float32(0.0)
        cross_p = jnp.float32(0.0)

    # --------------- Pack the three per-tile scalars into the out block ------
    sub = lax.broadcasted_iota(jnp.int32, (1, 8, 128), 1)
    lane = lax.broadcasted_iota(jnp.int32, (1, 8, 128), 2)
    row0 = sub == 0
    out_ref[...] = (jnp.where(row0 & (lane == 0), ce_p, 0.0)
                    + jnp.where(row0 & (lane == 1), qlogq_p, 0.0)
                    + jnp.where(row0 & (lane == 2), cross_p, 0.0))


def _round_up(x, m):
    return ((x + m - 1) // m) * m


def _vmem_budget():
    """Per-chip working-set budget + scoped VMEM limit."""
    cap = None
    try:
        info = pltpu.get_tpu_info()
        cap = int(getattr(info, "vmem_capacity_bytes", 0)) or None
    except Exception:
        cap = None
    if cap is None:
        cap = 64 * 1024 * 1024            # conservative (v7x per-TC VMEM)
    budget = min(int(cap * 0.6), 64 * 1024 * 1024)   # ~38 MiB v7x, 64 MiB v5e/v6e
    limit = int(min(cap * 0.85, budget + 32 * 1024 * 1024))
    return budget, limit


def _pick_tile(batch, num_classes, ensemble, itemsize, vmem_budget):
    # (8,128)-aware footprint: VMEM stores lane-padded tiles, so the class dim
    # occupies round_up(C,128) words and a (tb,1) column occupies tb x 128.
    c_pad = _round_up(num_classes, 128)
    per_row = (2 * ((ensemble + 1) * c_pad * itemsize + 128 * 4)   # 2x-buffered input blocks
               + 8 * c_pad * 4)                                    # f32 temps + qsum/ssum carries
    tb = int(vmem_budget) // max(per_row, 1)
    tb = max(8, min(tb, 4096))
    tb -= tb % 8
    cap = max(8, (batch // 8) * 8)
    return max(8, min(tb, cap))


def composite_loss(ensemble_logits, individual_logits, targets,
                   total_uncertainty, predictions, *,
                   lambda_diversity=LAMBDA_DIVERSITY,
                   lambda_uncertainty=LAMBDA_UNCERTAINTY,
                   tb=None):
    # TODO(synk): optional class_weights of nn.CrossEntropyLoss not implemented
    # (module default is None / unweighted mean).
    B, C = ensemble_logits.shape
    M = individual_logits.shape[0]
    itemsize = jnp.dtype(ensemble_logits.dtype).itemsize

    vmem_budget, vmem_limit = _vmem_budget()
    if tb is None:
        tb = _pick_tile(B, C, M, itemsize, vmem_budget)
    tb = max(8, (int(tb) // 8) * 8)
    n_tiles = (B + tb - 1) // tb

    # Only targets enter the kernel as a side stream; predictions/uncertainty
    # are consumed by the (trivial) wrapper-side uncertainty regularizer.
    tgt = targets.astype(jnp.int32).reshape(B, 1)

    cost = pl.CostEstimate(
        flops=int((6 * M + 8) * B * C),
        transcendentals=int((M + 1) * B * C + (2 * M + 2) * B),
        bytes_accessed=int((M + 1) * B * C * itemsize + B * 4
                           + n_tiles * 8 * 128 * 4),
    )

    kernel = functools.partial(_composite_loss_kernel, valid_rows=B)

    parts = pl.pallas_call(
        kernel,
        out_shape=jax.ShapeDtypeStruct((n_tiles, 8, 128), jnp.float32),
        grid_spec=pltpu.PrefetchScalarGridSpec(
            num_scalar_prefetch=0,
            grid=(n_tiles,),
            in_specs=[
                pl.BlockSpec((tb, C), lambda i: (i, 0)),
                pl.BlockSpec((M, tb, C), lambda i: (0, i, 0)),
                pl.BlockSpec((tb, 1), lambda i: (i, 0)),
            ],
            out_specs=pl.BlockSpec((1, 8, 128), lambda i: (i, 0, 0)),
        ),
        compiler_params=pltpu.CompilerParams(
            dimension_semantics=("parallel",),   # batch tiles are independent -> megacore on v7x
            vmem_limit_bytes=int(vmem_limit),
        ),
        cost_estimate=cost,
    )(ensemble_logits, individual_logits, tgt)

    # ---- tiny host-side finalize (cross-tile reduce + means) ----------------
    sums = jnp.sum(parts[:, 0, :3], axis=0)                 # (3,)
    inv_b = jnp.float32(1.0 / B)
    ce = sums[0] * inv_b
    if M > 1:
        total_kl = (M * sums[1] - sums[2]) * inv_b           # sum of batchmean KLs
        div = -total_kl / (M * (M - 1))
    else:
        div = jnp.float32(0.0)

    u = total_uncertainty.astype(jnp.float32)
    correct = (predictions == targets).astype(jnp.float32)
    unc = jnp.mean((1.0 - correct) * u + correct * (1.0 - u))

    total = ce + lambda_diversity * div + lambda_uncertainty * unc
    loss_dict = {
        "total_loss": total,
        "ce_loss": ce,
        "diversity_loss": div,
        "uncertainty_loss": unc,
    }
    return total, loss_dict


def _reference(ensemble_logits, individual_logits, targets, total_uncertainty,
               predictions, lambda_diversity=LAMBDA_DIVERSITY,
               lambda_uncertainty=LAMBDA_UNCERTAINTY):
    """Pure-JAX reference mirroring the PyTorch module semantics."""
    B = ensemble_logits.shape[0]
    M = individual_logits.shape[0]
    logp = jax.nn.log_softmax(ensemble_logits.astype(jnp.float32), axis=-1)
    ce = -jnp.mean(jnp.take_along_axis(
        logp, targets[:, None].astype(jnp.int32), axis=-1))

    probs = jax.nn.softmax(individual_logits.astype(jnp.float32), axis=-1)
    q = probs + EPS
    logq = jnp.log(q)
    total_kl = 0.0
    for m in range(M):
        for mp in range(M):
            if m != mp:
                total_kl = total_kl + jnp.sum(q[m] * (logq[m] - logq[mp])) / B
    div = -total_kl / (M * (M - 1)) if M > 1 else jnp.float32(0.0)

    u = total_uncertainty.astype(jnp.float32)
    correct = (predictions == targets).astype(jnp.float32)
    unc = jnp.mean((1.0 - correct) * u + correct * (1.0 - u))
    total = ce + lambda_diversity * div + lambda_uncertainty * unc
    return total, ce, div, unc


if __name__ == "__main__":
    key = jax.random.PRNGKey(0)
    k1, k2, k3, k4, k5 = jax.random.split(key, 5)

    # ensemble_size, batch_size (deliberately not a tile multiple), num_classes
    M, B, C = 4, 22, 8
    ensemble_logits = jax.random.normal(k1, (B, C), dtype=jnp.float32)
    individual_logits = jax.random.normal(k2, (M, B, C), dtype=jnp.float32)
    targets = jax.random.randint(k3, (B,), 0, C, dtype=jnp.int32)
    total_uncertainty = jax.random.uniform(k4, (B,), dtype=jnp.float32)
    predictions = jax.random.randint(k5, (B,), 0, C, dtype=jnp.int32)

    # tb=8 -> 3 batch tiles; the last one overhangs the batch by 2 rows so the
    # in-kernel ragged-tail masking/sanitization path is exercised.
    total, loss_dict = composite_loss(
        ensemble_logits, individual_logits, targets, total_uncertainty,
        predictions, tb=8)
    total = jax.block_until_ready(total)

    ref_total, ref_ce, ref_div, ref_unc = _reference(
        ensemble_logits, individual_logits, targets, total_uncertainty,
        predictions)

    assert jnp.allclose(total, ref_total, rtol=1e-5, atol=2e-5), \
        (float(total), float(ref_total))
    assert jnp.allclose(loss_dict["ce_loss"], ref_ce, rtol=1e-5, atol=2e-5)
    assert jnp.allclose(loss_dict["diversity_loss"], ref_div, rtol=1e-5, atol=2e-5)
    assert jnp.allclose(loss_dict["uncertainty_loss"], ref_unc, rtol=1e-5, atol=2e-5)

    print("KERNEL_OK")
</pallas_src>

<mosaic_0001>
module attributes {stable_mosaic.version = 11 : i64} {
  func.func @_composite_loss_kernel(%arg0: i32, %arg1: memref<8x8xf32, #tpu.memory_space<vmem>>, %arg2: memref<4x8x8xf32, #tpu.memory_space<vmem>>, %arg3: memref<8x1xi32, #tpu.memory_space<vmem>>, %arg4: memref<1x8x128xf32, #tpu.memory_space<vmem>>) attributes {dimension_semantics = [#tpu.dimension_semantics<parallel>], iteration_bounds = array<i64: 3>, scalar_prefetch = 0 : i64, scratch_operands = 0 : i64, tpu.core_type = #tpu.core_type<tc>, window_params = [{transform_indices = @transform_0, window_bounds = array<i64: 8, 8>}, {transform_indices = @transform_1, window_bounds = array<i64: 4, 8, 8>}, {transform_indices = @transform_2, window_bounds = array<i64: 8, 1>}, {transform_indices = @transform_3, window_bounds = array<i64: 1, 8, 128>}]} {
    %c8_i32 = arith.constant 8 : i32
    %0 = arith.muli %arg0, %c8_i32 : i32
    %1 = tpu.iota {dimensions = array<i32: 0>} : vector<8x1xi32>
    %2 = vector.broadcast %0 : i32 to vector<8x1xi32>
    %3 = arith.addi %2, %1 : vector<8x1xi32>
    %c22_i32 = arith.constant 22 : i32
    %4 = vector.broadcast %c22_i32 : i32 to vector<8x1xi32>
    %5 = arith.cmpi slt, %3, %4 : vector<8x1xi32>
    %6 = arith.extui %5 : vector<8x1xi1> to vector<8x1xi32>
    %7 = arith.sitofp %6 : vector<8x1xi32> to vector<8x1xf32>
    %c0 = arith.constant 0 : index
    %c0_0 = arith.constant 0 : index
    %8 = vector.load %arg1[%c0, %c0_0] : memref<8x8xf32, #tpu.memory_space<vmem>>, vector<8x8xf32>
    %cst = arith.constant 0.000000e+00 : f32
    %9 = vector.shape_cast %5 : vector<8x1xi1> to vector<8x1xi1>
    %10 = vector.broadcast %9 : vector<8x1xi1> to vector<8x8xi1>
    %11 = vector.broadcast %cst : f32 to vector<8x8xf32>
    %12 = arith.select %10, %8, %11 : vector<8x8xi1>, vector<8x8xf32>
    %cst_1 = arith.constant dense<0xFF800000> : vector<8xf32>
    %13 = vector.multi_reduction <maximumf>, %12, %cst_1 [1] : vector<8x8xf32> to vector<8xf32>
    %14 = vector.shape_cast %13 : vector<8xf32> to vector<8x1xf32>
    %15 = vector.broadcast %14 : vector<8x1xf32> to vector<8x8xf32>
    %16 = arith.subf %12, %15 : vector<8x8xf32>
    %17 = math.exp %16 : vector<8x8xf32>
    %cst_2 = arith.constant dense<0.000000e+00> : vector<8xf32>
    %18 = vector.multi_reduction <add>, %17, %cst_2 [1] : vector<8x8xf32> to vector<8xf32>
    %19 = vector.shape_cast %18 : vector<8xf32> to vector<8x1xf32>
    %20 = math.log %19 : vector<8x1xf32>
    %21 = arith.addf %14, %20 : vector<8x1xf32>
    %c0_3 = arith.constant 0 : index
    %c0_4 = arith.constant 0 : index
    %22 = vector.load %arg3[%c0_3, %c0_4] : memref<8x1xi32, #tpu.memory_space<vmem>>, vector<8x1xi32>
    %23 = tpu.iota {dimensions = array<i32: 1>} : vector<8x8xi32>
    %24 = vector.broadcast %22 : vector<8x1xi32> to vector<8x8xi32>
    %25 = arith.cmpi eq, %23, %24 : vector<8x8xi32>
    %cst_5 = arith.constant 0.000000e+00 : f32
    %26 = vector.broadcast %cst_5 : f32 to vector<8x8xf32>
    %27 = arith.select %25, %12, %26 : vector<8x8xi1>, vector<8x8xf32>
    %cst_6 = arith.constant dense<0.000000e+00> : vector<8xf32>
    %28 = vector.multi_reduction <add>, %27, %cst_6 [1] : vector<8x8xf32> to vector<8xf32>
    %29 = vector.shape_cast %28 : vector<8xf32> to vector<8x1xf32>
    %30 = arith.subf %21, %29 : vector<8x1xf32>
    %31 = arith.mulf %7, %30 : vector<8x1xf32>
    %32 = vector.shape_cast %31 : vector<8x1xf32> to vector<1x8x1xf32>
    %cst_7 = arith.constant dense<0.000000e+00> : vector<1xf32>
    %33 = vector.multi_reduction <add>, %32, %cst_7 [1, 2] : vector<1x8x1xf32> to vector<1xf32>
    %34 = vector.shape_cast %33 : vector<1xf32> to vector<1x1x1xf32>
    %35 = vector.extract %34[0, 0, 0] : f32 from vector<1x1x1xf32>
    %cst_8 = arith.constant 0.000000e+00 : f32
    %36 = vector.broadcast %cst_8 : f32 to vector<8x8xf32>
    %cst_9 = arith.constant 0.000000e+00 : f32
    %37 = vector.broadcast %cst_9 : f32 to vector<8x8xf32>
    %cst_10 = arith.constant 0.000000e+00 : f32
    %38 = vector.broadcast %cst_10 : f32 to vector<8x1xf32>
    %c0_i32 = arith.constant 0 : i32
    %39 = arith.index_cast %c0_i32 : i32 to index
    %c0_11 = arith.constant 0 : index
    %c0_12 = arith.constant 0 : index
    %40 = vector.load %arg2[%39, %c0_11, %c0_12] : memref<4x8x8xf32, #tpu.memory_space<vmem>>, vector<1x8x8xf32>
    %41 = vector.shape_cast %40 : vector<1x8x8xf32> to vector<8x8xf32>
    %cst_13 = arith.constant 0.000000e+00 : f32
    %42 = vector.shape_cast %5 : vector<8x1xi1> to vector<8x1xi1>
    %43 = vector.broadcast %42 : vector<8x1xi1> to vector<8x8xi1>
    %44 = vector.broadcast %cst_13 : f32 to vector<8x8xf32>
    %45 = arith.select %43, %41, %44 : vector<8x8xi1>, vector<8x8xf32>
    %cst_14 = arith.constant dense<0xFF800000> : vector<8xf32>
    %46 = vector.multi_reduction <maximumf>, %45, %cst_14 [1] : vector<8x8xf32> to vector<8xf32>
    %47 = vector.shape_cast %46 : vector<8xf32> to vector<8x1xf32>
    %48 = vector.broadcast %47 : vector<8x1xf32> to vector<8x8xf32>
    %49 = arith.subf %45, %48 : vector<8x8xf32>
    %50 = math.exp %49 : vector<8x8xf32>
    %cst_15 = arith.constant dense<0.000000e+00> : vector<8xf32>
    %51 = vector.multi_reduction <add>, %50, %cst_15 [1] : vector<8x8xf32> to vector<8xf32>
    %52 = vector.shape_cast %51 : vector<8xf32> to vector<8x1xf32>
    %53 = tpu.reciprocal %52 : vector<8x1xf32> -> vector<8x1xf32>
    %54 = vector.broadcast %53 : vector<8x1xf32> to vector<8x8xf32>
    %55 = arith.mulf %50, %54 : vector<8x8xf32>
    %56 = math.log %52 : vector<8x1xf32>
    %57 = vector.broadcast %56 : vector<8x1xf32> to vector<8x8xf32>
    %58 = arith.subf %49, %57 : vector<8x8xf32>
    %59 = arith.mulf %55, %58 : vector<8x8xf32>
    %cst_16 = arith.constant dense<0.000000e+00> : vector<8xf32>
    %60 = vector.multi_reduction <add>, %59, %cst_16 [1] : vector<8x8xf32> to vector<8xf32>
    %61 = vector.shape_cast %60 : vector<8xf32> to vector<8x1xf32>
    %62 = arith.addf %38, %61 : vector<8x1xf32>
    %63 = arith.addf %36, %55 : vector<8x8xf32>
    %64 = arith.addf %37, %58 : vector<8x8xf32>
    %c1_i32 = arith.constant 1 : i32
    %65 = arith.index_cast %c1_i32 : i32 to index
    %c0_17 = arith.constant 0 : index
    %c0_18 = arith.constant 0 : index
    %66 = vector.load %arg2[%65, %c0_17, %c0_18] : memref<4x8x8xf32, #tpu.memory_space<vmem>>, vector<1x8x8xf32>
    %67 = vector.shape_cast %66 : vector<1x8x8xf32> to vector<8x8xf32>
    %cst_19 = arith.constant 0.000000e+00 : f32
    %68 = vector.shape_cast %5 : vector<8x1xi1> to vector<8x1xi1>
    %69 = vector.broadcast %68 : vector<8x1xi1> to vector<8x8xi1>
    %70 = vector.broadcast %cst_19 : f32 to vector<8x8xf32>
    %71 = arith.select %69, %67, %70 : vector<8x8xi1>, vector<8x8xf32>
    %cst_20 = arith.constant dense<0xFF800000> : vector<8xf32>
    %72 = vector.multi_reduction <maximumf>, %71, %cst_20 [1] : vector<8x8xf32> to vector<8xf32>
    %73 = vector.shape_cast %72 : vector<8xf32> to vector<8x1xf32>
    %74 = vector.broadcast %73 : vector<8x1xf32> to vector<8x8xf32>
    %75 = arith.subf %71, %74 : vector<8x8xf32>
    %76 = math.exp %75 : vector<8x8xf32>
    %cst_21 = arith.constant dense<0.000000e+00> : vector<8xf32>
    %77 = vector.multi_reduction <add>, %76, %cst_21 [1] : vector<8x8xf32> to vector<8xf32>
    %78 = vector.shape_cast %77 : vector<8xf32> to vector<8x1xf32>
    %79 = tpu.reciprocal %78 : vector<8x1xf32> -> vector<8x1xf32>
    %80 = vector.broadcast %79 : vector<8x1xf32> to vector<8x8xf32>
    %81 = arith.mulf %76, %80 : vector<8x8xf32>
    %82 = math.log %78 : vector<8x1xf32>
    %83 = vector.broadcast %82 : vector<8x1xf32> to vector<8x8xf32>
    %84 = arith.subf %75, %83 : vector<8x8xf32>
    %85 = arith.mulf %81, %84 : vector<8x8xf32>
    %cst_22 = arith.constant dense<0.000000e+00> : vector<8xf32>
    %86 = vector.multi_reduction <add>, %85, %cst_22 [1] : vector<8x8xf32> to vector<8xf32>
    %87 = vector.shape_cast %86 : vector<8xf32> to vector<8x1xf32>
    %88 = arith.addf %62, %87 : vector<8x1xf32>
    %89 = arith.addf %63, %81 : vector<8x8xf32>
    %90 = arith.addf %64, %84 : vector<8x8xf32>
    %c2_i32 = arith.constant 2 : i32
    %91 = arith.index_cast %c2_i32 : i32 to index
    %c0_23 = arith.constant 0 : index
    %c0_24 = arith.constant 0 : index
    %92 = vector.load %arg2[%91, %c0_23, %c0_24] : memref<4x8x8xf32, #tpu.memory_space<vmem>>, vector<1x8x8xf32>
    %93 = vector.shape_cast %92 : vector<1x8x8xf32> to vector<8x8xf32>
    %cst_25 = arith.constant 0.000000e+00 : f32
    %94 = vector.shape_cast %5 : vector<8x1xi1> to vector<8x1xi1>
    %95 = vector.broadcast %94 : vector<8x1xi1> to vector<8x8xi1>
    %96 = vector.broadcast %cst_25 : f32 to vector<8x8xf32>
    %97 = arith.select %95, %93, %96 : vector<8x8xi1>, vector<8x8xf32>
    %cst_26 = arith.constant dense<0xFF800000> : vector<8xf32>
    %98 = vector.multi_reduction <maximumf>, %97, %cst_26 [1] : vector<8x8xf32> to vector<8xf32>
    %99 = vector.shape_cast %98 : vector<8xf32> to vector<8x1xf32>
    %100 = vector.broadcast %99 : vector<8x1xf32> to vector<8x8xf32>
    %101 = arith.subf %97, %100 : vector<8x8xf32>
    %102 = math.exp %101 : vector<8x8xf32>
    %cst_27 = arith.constant dense<0.000000e+00> : vector<8xf32>
    %103 = vector.multi_reduction <add>, %102, %cst_27 [1] : vector<8x8xf32> to vector<8xf32>
    %104 = vector.shape_cast %103 : vector<8xf32> to vector<8x1xf32>
    %105 = tpu.reciprocal %104 : vector<8x1xf32> -> vector<8x1xf32>
    %106 = vector.broadcast %105 : vector<8x1xf32> to vector<8x8xf32>
    %107 = arith.mulf %102, %106 : vector<8x8xf32>
    %108 = math.log %104 : vector<8x1xf32>
    %109 = vector.broadcast %108 : vector<8x1xf32> to vector<8x8xf32>
    %110 = arith.subf %101, %109 : vector<8x8xf32>
    %111 = arith.mulf %107, %110 : vector<8x8xf32>
    %cst_28 = arith.constant dense<0.000000e+00> : vector<8xf32>
    %112 = vector.multi_reduction <add>, %111, %cst_28 [1] : vector<8x8xf32> to vector<8xf32>
    %113 = vector.shape_cast %112 : vector<8xf32> to vector<8x1xf32>
    %114 = arith.addf %88, %113 : vector<8x1xf32>
    %115 = arith.addf %89, %107 : vector<8x8xf32>
    %116 = arith.addf %90, %110 : vector<8x8xf32>
    %c3_i32 = arith.constant 3 : i32
    %117 = arith.index_cast %c3_i32 : i32 to index
    %c0_29 = arith.constant 0 : index
    %c0_30 = arith.constant 0 : index
    %118 = vector.load %arg2[%117, %c0_29, %c0_30] : memref<4x8x8xf32, #tpu.memory_space<vmem>>, vector<1x8x8xf32>
    %119 = vector.shape_cast %118 : vector<1x8x8xf32> to vector<8x8xf32>
    %cst_31 = arith.constant 0.000000e+00 : f32
    %120 = vector.shape_cast %5 : vector<8x1xi1> to vector<8x1xi1>
    %121 = vector.broadcast %120 : vector<8x1xi1> to vector<8x8xi1>
    %122 = vector.broadcast %cst_31 : f32 to vector<8x8xf32>
    %123 = arith.select %121, %119, %122 : vector<8x8xi1>, vector<8x8xf32>
    %cst_32 = arith.constant dense<0xFF800000> : vector<8xf32>
    %124 = vector.multi_reduction <maximumf>, %123, %cst_32 [1] : vector<8x8xf32> to vector<8xf32>
    %125 = vector.shape_cast %124 : vector<8xf32> to vector<8x1xf32>
    %126 = vector.broadcast %125 : vector<8x1xf32> to vector<8x8xf32>
    %127 = arith.subf %123, %126 : vector<8x8xf32>
    %128 = math.exp %127 : vector<8x8xf32>
    %cst_33 = arith.constant dense<0.000000e+00> : vector<8xf32>
    %129 = vector.multi_reduction <add>, %128, %cst_33 [1] : vector<8x8xf32> to vector<8xf32>
    %130 = vector.shape_cast %129 : vector<8xf32> to vector<8x1xf32>
    %131 = tpu.reciprocal %130 : vector<8x1xf32> -> vector<8x1xf32>
    %132 = vector.broadcast %131 : vector<8x1xf32> to vector<8x8xf32>
    %133 = arith.mulf %128, %132 : vector<8x8xf32>
    %134 = math.log %130 : vector<8x1xf32>
    %135 = vector.broadcast %134 : vector<8x1xf32> to vector<8x8xf32>
    %136 = arith.subf %127, %135 : vector<8x8xf32>
    %137 = arith.mulf %133, %136 : vector<8x8xf32>
    %cst_34 = arith.constant dense<0.000000e+00> : vector<8xf32>
    %138 = vector.multi_reduction <add>, %137, %cst_34 [1] : vector<8x8xf32> to vector<8xf32>
    %139 = vector.shape_cast %138 : vector<8xf32> to vector<8x1xf32>
    %140 = arith.addf %114, %139 : vector<8x1xf32>
    %141 = arith.addf %115, %133 : vector<8x8xf32>
    %142 = arith.addf %116, %136 : vector<8x8xf32>
    %c4_i32 = arith.constant 4 : i32
    %143 = arith.mulf %7, %140 : vector<8x1xf32>
    %144 = vector.shape_cast %143 : vector<8x1xf32> to vector<1x8x1xf32>
    %cst_35 = arith.constant dense<0.000000e+00> : vector<1xf32>
    %145 = vector.multi_reduction <add>, %144, %cst_35 [1, 2] : vector<1x8x1xf32> to vector<1xf32>
    %146 = vector.shape_cast %145 : vector<1xf32> to vector<1x1x1xf32>
    %147 = vector.extract %146[0, 0, 0] : f32 from vector<1x1x1xf32>
    %148 = arith.mulf %141, %142 : vector<8x8xf32>
    %149 = vector.broadcast %7 : vector<8x1xf32> to vector<8x8xf32>
    %150 = arith.mulf %149, %148 : vector<8x8xf32>
    %151 = vector.shape_cast %150 : vector<8x8xf32> to vector<1x8x8xf32>
    %cst_36 = arith.constant dense<0.000000e+00> : vector<1xf32>
    %152 = vector.multi_reduction <add>, %151, %cst_36 [1, 2] : vector<1x8x8xf32> to vector<1xf32>
    %153 = vector.shape_cast %152 : vector<1xf32> to vector<1x1x1xf32>
    %154 = vector.extract %153[0, 0, 0] : f32 from vector<1x1x1xf32>
    %155 = tpu.iota {dimensions = array<i32: 1>} : vector<1x8x128xi32>
    %156 = tpu.iota {dimensions = array<i32: 2>} : vector<1x8x128xi32>
    %c0_i32_37 = arith.constant 0 : i32
    %157 = vector.broadcast %c0_i32_37 : i32 to vector<1x8x128xi32>
    %158 = arith.cmpi eq, %155, %157 : vector<1x8x128xi32>
    %c0_i32_38 = arith.constant 0 : i32
    %159 = vector.broadcast %c0_i32_38 : i32 to vector<1x8x128xi32>
    %160 = arith.cmpi eq, %156, %159 : vector<1x8x128xi32>
    %161 = arith.andi %158, %160 : vector<1x8x128xi1>
    %cst_39 = arith.constant 0.000000e+00 : f32
    %162 = vector.broadcast %35 : f32 to vector<1x8x128xf32>
    %163 = vector.broadcast %cst_39 : f32 to vector<1x8x128xf32>
    %164 = arith.select %161, %162, %163 : vector<1x8x128xi1>, vector<1x8x128xf32>
    %c1_i32_40 = arith.constant 1 : i32
    %165 = vector.broadcast %c1_i32_40 : i32 to vector<1x8x128xi32>
    %166 = arith.cmpi eq, %156, %165 : vector<1x8x128xi32>
    %167 = arith.andi %158, %166 : vector<1x8x128xi1>
    %cst_41 = arith.constant 0.000000e+00 : f32
    %168 = vector.broadcast %147 : f32 to vector<1x8x128xf32>
    %169 = vector.broadcast %cst_41 : f32 to vector<1x8x128xf32>
    %170 = arith.select %167, %168, %169 : vector<1x8x128xi1>, vector<1x8x128xf32>
    %171 = arith.addf %164, %170 : vector<1x8x128xf32>
    %c2_i32_42 = arith.constant 2 : i32
    %172 = vector.broadcast %c2_i32_42 : i32 to vector<1x8x128xi32>
    %173 = arith.cmpi eq, %156, %172 : vector<1x8x128xi32>
    %174 = arith.andi %158, %173 : vector<1x8x128xi1>
    %cst_43 = arith.constant 0.000000e+00 : f32
    %175 = vector.broadcast %154 : f32 to vector<1x8x128xf32>
    %176 = vector.broadcast %cst_43 : f32 to vector<1x8x128xf32>
    %177 = arith.select %174, %175, %176 : vector<1x8x128xi1>, vector<1x8x128xf32>
    %178 = arith.addf %171, %177 : vector<1x8x128xf32>
    %c0_44 = arith.constant 0 : index
    %c0_45 = arith.constant 0 : index
    %c0_46 = arith.constant 0 : index
    %179 = vector.load %arg4[%c0_44, %c0_45, %c0_46] : memref<1x8x128xf32, #tpu.memory_space<vmem>>, vector<1x8x128xf32>
    tpu.vector_store %arg4[%c0_44, %c0_45, %c0_46], %178 {strides = array<i32>} : memref<1x8x128xf32, #tpu.memory_space<vmem>>, vector<1x8x128xf32>,
    return
  }
  func.func @transform_0(%arg0: i32) -> (i32, i32) {
    %c0_i32 = arith.constant 0 : i32
    %c0_i32_0 = arith.constant 0 : i32
    return %arg0, %c0_i32 : i32, i32
  }
  func.func @transform_1(%arg0: i32) -> (i32, i32, i32) {
    %c0_i32 = arith.constant 0 : i32
    %c0_i32_0 = arith.constant 0 : i32
    %c0_i32_1 = arith.constant 0 : i32
    return %c0_i32, %arg0, %c0_i32_0 : i32, i32, i32
  }
  func.func @transform_2(%arg0: i32) -> (i32, i32) {
    %c0_i32 = arith.constant 0 : i32
    %c0_i32_0 = arith.constant 0 : i32
    return %arg0, %c0_i32 : i32, i32
  }
  func.func @transform_3(%arg0: i32) -> (i32, i32, i32) {
    %c0_i32 = arith.constant 0 : i32
    %c0_i32_0 = arith.constant 0 : i32
    %c0_i32_1 = arith.constant 0 : i32
    return %arg0, %c0_i32, %c0_i32_0 : i32, i32, i32
  }
}

</mosaic_0001>

<bundles_post_ra>
// kernel: tpu_custom_call.1
= control target key start
LH: loop header
LB: loop body
LE: loop exit
PB: predicated region body
PF: predicated region fallthrough
CT: control target
= control target key end

     0   :  { %8 = vsyncpa [#allocation4], 0  ;;  %s899_s0 = inlined_call_operand.vmem [shape: f32[22,8], index: 0, kind: input, shape index: {}]   ;;  %s900_s1 = inlined_call_operand.vmem [shape: f32[4,22,8], index: 1, kind: input, shape index: {}]   ;;  %s901_s2 = inlined_call_operand.vmem [shape: s32[22,1], index: 2, kind: input, shape index: {}]   ;;  %s902_s3 = inlined_call_operand.hbm [shape: f32[3,8,128], index: 3, kind: output, shape index: {}]  }
   0x1   :  { %10 = vsyncpa [#allocation4 + $0x1], 0  ;;  %s717_s12 = smov 0   ;;  %s719_s13 = smov 0  }
   0x2   :  { %s721_s14 = smov 0   ;;  %s723_s15 = smov 0  }
   0x3 LB: > { %s738_s16 = sadd.s32 4294967295, %s692_s15   ;;  %s534_s17 = sadd.s32 4294967294, %s692_s15   ;;  %s692_s15 = sphi %s723_s15, %s908_s15   ;;  %s688_s14 = sphi %s721_s14, %s907_s14   ;;  %s684_s13 = sphi %s719_s13, %s906_s13   ;;  %s680_s12 = sphi %s717_s12, %s905_s12  }
   0x4   : > { %s742_s18 = sadd.s32 1, %s692_s15   ;;  %s49_s19 = sadd.s32 1, %s688_s14 }
   0x5   : > { %s46_s20 = ssub.s32 %s692_s15, %s742_s18  ;;  %p56_p0 = scmp.ne.s32.totalorder %s688_s14, %s684_s13 }
   0x6   : > { %p47_p1 = scmp.eq.s32.totalorder %s46_s20, 0  ;;  %p57_p2 = scmp.eq.s32.totalorder %s692_s15, 0 }
   0x7   : > { %p112_p3 = scmp.eq.s32.totalorder %s738_s16, 2  ;;  %p117_p4 = scmp.ne.s32.totalorder %s684_s13, %s680_s12 }
   0x8   : > { %s754_s21 = scalar_select %p47_p1, %s688_s14, %s49_s19  }
   0x9   : > { %p58_p5 = por %p57_p2, %p56_p0  ;;  %p756_p6 = por %p112_p3, %p56_p0 }
   0xa   : > { %p118_p7 = scmp.eq.s32.totalorder %s534_s17, 2  ;;  %p536_p9 = scmp.ge.s32.totalorder %s692_s15, 3 }
   0xc   : > { %p760_p8 = por %p118_p7, %p117_p4  ;;  %134 = sbr.rel (%p536_p9) target bundleno = 26 (0x1a), region = 16 }
  0x13   : > { %144 = sbr.rel (!%p58_p5) target bundleno = 26 (0x1a), region = 24  ;;  %s146_s24 = sand.u32 (%p58_p5), 1, %s688_s14  }
  0x14   : > { %s538_s25 = sshll.u32 (%p58_p5), %s692_s15, 3  ;;  %s537_s26 = sshll.u32 (%p58_p5), %s146_s24, 5 }
  0x15   : > { %s150_s29 = scalar_lea.vmem (%p58_p5), %s900_s1, %s538_s25  ;;  %s148_s30 = scalar_lea.vmem (%p58_p5), [#allocation2], %s537_s26 }
  0x16   : > { %v184_v0 = vld [vmem:[%s150_s29] sm:$0xff] (%p58_p5)  ;;  %v186_v1 = vld [vmem:[%s150_s29 + $0x18] sm:$0xff] (%p58_p5)  ;;  %v188_v2 = vld [vmem:[%s150_s29 + $0x30] sm:$0xff] (%p58_p5) }
  0x17   : > { %185 = vst [vmem:[%s148_s30] sm:$0xff] (%p58_p5), %v184_v0  ;;  %187 = vst [vmem:[%s148_s30 + $0x8] sm:$0xff] (%p58_p5), %v186_v1  ;;  %v190_v3 = vld [vmem:[%s150_s29 + $0x48] sm:$0xff] (%p58_p5) }
  0x18   : > { %189 = vst [vmem:[%s148_s30 + $0x10] sm:$0xff] (%p58_p5), %v188_v2  ;;  %191 = vst [vmem:[%s148_s30 + $0x18] sm:$0xff] (%p58_p5), %v190_v3 }
  0x1a PF: > { %p539_p10 = scmp.ge.s32.totalorder %s692_s15, 1  ;;  %p203_p11 = scmp.lt.s32.totalorder %s692_s15, 4 }
  0x1c   : > { %p204_p12 = pnand %p539_p10, %p203_p11 }
  0x1d   : > { %s773_s4 = sand.u32 (!%p204_p12), 1, %s684_s13   ;;  %s544_s5 = sshll.u32 (!%p204_p12), %s738_s16, 3  ;;  %v250_v4 = vlaneseq (!%p204_p12)  ;;  %vm260_vm0 = vcmask (!%p204_p12), 64512   ;;  %v694_v23 = vmov (!%p204_p12), 0   ;;  %vm286_vm3 = vcmask (!%p204_p12), 7168  }
  0x1e   : > { %207 = sbr.rel (%p204_p12) target bundleno = 744 (0x2e8), region = 66  ;;  %s540_s6 = sshll.u32 (!%p204_p12), %s773_s4, 5  ;;  %v252_v5 = vstv (!%p204_p12), %s544_s5  ;;  %600 = vset.pattern.permute.xlu1 (!%p204_p12), %v694_v23  ;;  %601 = vset.pattern.permute.xlu0 (!%p204_p12), %v694_v23 }
  0x1f   : > { %p241_p13 = scmp.lt.s32.totalorder (!%p204_p12), %s738_s16, 2  ;;  %v779_v6 = vshrl.u32 (!%p204_p12), %v250_v4, 7  ;;  %s212_s7 = scalar_lea.vmem (!%p204_p12), [#allocation2], %s540_s6  ;;  %v832_v53 = vand.u32 (!%p204_p12), 127, %v250_v4 }
  0x20   : > { %v297_v7 = vld [vmem:[%s212_s7] sm:$0xff] (!%p204_p12)  ;;  %v547_v9 = vld [vmem:[%s212_s7 + $0x10] sm:$0xff] (!%p204_p12)  ;;  %v546_v10 = vld [vmem:[%s212_s7 + $0x8] sm:$0xff] (!%p204_p12)  ;;  %s541_s26 = sshll.u32 (!%p204_p12), %s773_s4, 3  ;;  %s550_s28 = sshll.u32 (!%p204_p12), %s738_s16, 7 }
  0x21   : > { %v785_v8 = vadd.s32 (!%p204_p12), %v252_v5, %v779_v6  ;;  %v548_v11 = vld [vmem:[%s212_s7 + $0x18] sm:$0xff] (!%p204_p12)  ;;  %vm420_vm4 = vcmp.eq.s32.totalorder (!%p204_p12), %v832_v53, 1  ;;  %vm415_vm5 = vcmp.eq.s32.totalorder (!%p204_p12), %v779_v6, 0  ;;  %vm416_vm6 = vcmp.eq.s32.totalorder (!%p204_p12), %v832_v53, 0  ;;  %s240_s30 = scalar_lea.vmem (!%p204_p12), [#allocation3], %s541_s26  ;;  %s696_s10 = smov (!%p204_p12), [#allocation3]  }
  0x22   : > { %vm421_vm7 = vmand (!%p204_p12), %vm415_vm5, %vm420_vm4  ;;  %vm425_vm8 = vcmp.eq.s32.totalorder (!%p204_p12), %v832_v53, 2  ;;  %s445_s5 = sshll.u32 (!%p204_p12), %s240_s30, 4  ;;  %s634_s11 = sshll.u32 (!%p204_p12), %s696_s10, 4  ;;  %s858_s5 = int_to_ptr.vmem [resolvable:$true] %s445_s5  ;;  %s635_s11 = int_to_ptr.vmem [resolvable:$false] %s634_s11 }
  0x23   : > { %vm254_vm1 = vcmp.lt.s32.totalorder (!%p204_p12), %v785_v8, 22  ;;  %vm417_vm9 = vmand (!%p204_p12), %vm415_vm5, %vm416_vm6  ;;  %p637_p3 = scmp.lt.s32.totalorder (!%p204_p12), %s858_s5, %s635_s11 }
  0x24   : > { %v298_v12 = vsel (!%p204_p12), %vm254_vm1, %v297_v7, 0.0  ;;  %v346_v13 = vsel (!%p204_p12), %vm254_vm1, %v547_v9, 0.0  ;;  %v322_v14 = vsel (!%p204_p12), %vm254_vm1, %v546_v10, 0.0  ;;  %v370_v15 = vsel (!%p204_p12), %vm254_vm1, %v548_v11, 0.0  ;;  %vm426_vm10 = vmand (!%p204_p12), %vm415_vm5, %vm425_vm8 }
  0x25   : > { %s782_s8 = scalar_select %p241_p13, %s738_s16, 2  ;;  %v299_v16 = vsel %vm260_vm0, %v298_v12, -inf  ;;  %v347_v17 = vsel %vm260_vm0, %v346_v13, -inf  ;;  %v323_v19 = vsel %vm260_vm0, %v322_v14, -inf  ;;  %v371_v20 = vsel %vm260_vm0, %v370_v15, -inf }
  0x26   : > { %300 = vmax.xlane.f32.xlu0 %v299_v16  ;;  %348 = vmax.xlane.f32.xlu1 %v347_v17  ;;  %s432_s16 = scalar_lea.sflag [#allocation4], %s773_s4 }
  0x27   : > { %s542_s9 = sshll.u32 %s782_s8, 3  ;;  %s856_s8 = scalar_lea.hbm %s902_s3, %s550_s28 }
  0x28   : > { %s244_s17 = scalar_lea.vmem %s899_s0, %s542_s9  ;;  %s248_s24 = scalar_lea.vmem %s901_s2, %s542_s9 }
  0x29   : > { %v257_v18 = vld [vmem:[%s244_s17] sm:$0xff]  ;;  %s630_s9 = scalar_lea.vmem %s858_s5, 128  ;;  %s636_s17 = scalar_lea.vmem %s635_s11, 256 }
  0x2a   : > { %v259_v21 = vsel %vm254_vm1, %v257_v18, 0.0  ;;  %324 = vmax.xlane.f32.xlu0 %v323_v19  ;;  %372 = vmax.xlane.f32.xlu1 %v371_v20  ;;  %v273_v49 = vld [vmem:[%s248_s24] sm:$0xff]  ;;  %p631_p0 = scmp.ne.s32.totalorder %s858_s5, %s630_s9  ;;  %p638_p4 = scmp.lt.s32.totalorder %s636_s17, %s630_s9 }
  0x2b   : > { %v261_v22 = vsel %vm260_vm0, %v259_v21, -inf }
  0x2c   : > { %p632_p1 = pnand %p631_p0, %p756_p6  ;;  %p639_p5 = por %p638_p4, %p637_p3 }
  0x2e   : > { %262 = vmax.xlane.f32.xlu0 %v261_v22  ;;  %p633_p2 = pneg %p632_p1 }
  0x30   : > { %p640_p7 = pnand %p639_p5, %p633_p2 }
  0xb3   : > { %v301_v24 = vpop.xlane.xlu0 %300  ;;  %v349_v25 = vpop.xlane.xlu1 %348 }
  0xb4   : > { %v302_v26 = vsub.f32 %v298_v12, %v301_v24  ;;  %v809_v27 = vsub.f32 %v346_v13, %v349_v25 }
  0xb6   : > { %v303_v28 = vmul.f32 1.442695, %v302_v26  ;;  %v351_v29 = vmul.f32 1.442695, %v809_v27 }
  0xb7   : > { %v325_v30 = vpop.xlane.xlu0 %324  ;;  %v373_v31 = vpop.xlane.xlu1 %372 }
  0xb8   : > { %602 = vpow2.f32 %v303_v28  ;;  %v812_v32 = vsub.f32 %v322_v14, %v325_v30  ;;  %v814_v33 = vsub.f32 %v370_v15, %v373_v31 }
  0xb9   : > { %604 = vpow2.f32 %v351_v29 }
  0xba   : > { %v327_v34 = vmul.f32 1.442695, %v812_v32  ;;  %v375_v35 = vmul.f32 1.442695, %v814_v33 }
  0xbb   : > { %v818_v36 = vpop.xlane.xlu0 %262 }
  0xbc   : > { %606 = vpow2.f32 %v327_v34  ;;  %v264_v37 = vsub.f32 %v259_v21, %v818_v36 }
  0xbd   : > { %608 = vpow2.f32 %v375_v35 }
  0xbe   : > { %v265_v38 = vmul.f32 1.442695, %v264_v37 }
  0xc0   : > { %610 = vpow2.f32 %v265_v38  ;;  %v695_v38 = vmov 0.0  }
  0xc2   : > { %v603_v39 = vpop.eup %602 }
  0xc3   : > { %v605_v40 = vpop.eup %604  ;;  %v305_v41 = vsel %vm260_vm0, %v603_v39, 0.0 }
  0xc4   : > { %306 = vadd.xlane.f32.xlu1 %v305_v41  ;;  %v353_v42 = vsel %vm260_vm0, %v605_v40, 0.0 }
  0xc6   : > { %v607_v43 = vpop.eup %606 }
  0xc7   : > { %v609_v44 = vpop.eup %608  ;;  %v329_v45 = vsel %vm260_vm0, %v607_v43, 0.0 }
  0xc8   : > { %354 = vadd.xlane.f32.xlu1 %v353_v42  ;;  %330 = vadd.xlane.f32.xlu0 %v329_v45  ;;  %v377_v46 = vsel %vm260_vm0, %v609_v44, 0.0 }
  0xca   : > { %v611_v47 = vpop.eup %610 }
  0xcb   : > { %v267_v48 = vsel %vm260_vm0, %v611_v47, 0.0 }
  0xcc   : > { %378 = vadd.xlane.f32.xlu0 %v377_v46 }
  0xd0   : > { %268 = vadd.xlane.f32.xlu0 %v267_v48 }
  0xd9   : > { %277 = vperm.xlu1 %600, %v273_v49  }
 0x151   : > { %v307_v50 = vpop.xlane.xlu1 %306 }
 0x152   : > { %612 = vrcp.f32 %v307_v50 }
 0x153   : > { %614 = vlog2.f32 %v307_v50 }
 0x155   : > { %v355_v51 = vpop.xlane.xlu1 %354  ;;  %v331_v52 = vpop.xlane.xlu0 %330 }
 0x156   : > { %616 = vrcp.f32 %v355_v51 }
 0x157   : > { %618 = vlog2.f32 %v355_v51 }
 0x158   : > { %620 = vrcp.f32 %v331_v52 }
 0x159   : > { %622 = vlog2.f32 %v331_v52  ;;  %v278_v54 = vpop.permute.xlu1 %277  ;;  %v379_v55 = vpop.xlane.xlu0 %378 }
 0x15a   : > { %vm279_vm2 = vcmp.eq.s32.totalorder %v832_v53, %v278_v54  ;;  %624 = vrcp.f32 %v379_v55 }
 0x15b   : > { %626 = vlog2.f32 %v379_v55  ;;  %v280_v56 = vsel %vm279_vm2, %v259_v21, 0.0 }
 0x15c   : > { %v613_v57 = vpop.eup %612  ;;  %v281_v58 = vsel %vm260_vm0, %v280_v56, 0.0 }
 0x15d   : > { %v615_v59 = vpop.eup %614  ;;  %282 = vadd.xlane.f32.xlu1 %v281_v58  ;;  %v309_v62 = vmul.f32 %v613_v57, %v603_v39  ;;  %v545_v39 = vsel %vm254_vm1, 1.0, %v695_v38 }
 0x15e   : > { %v311_v60 = vmul.f32 0.6931472, %v615_v59 }
 0x160   : > { %v617_v61 = vpop.eup %616  ;;  %v312_v63 = vsub.f32 %v302_v26, %v311_v60 }
 0x161   : > { %v619_v0 = vpop.eup %618  ;;  %v357_v13 = vmul.f32 %v617_v61, %v605_v40 }
 0x162   : > { %v621_v1 = vpop.eup %620  ;;  %v359_v2 = vmul.f32 0.6931472, %v619_v0  ;;  %v313_v3 = vmul.f32 %v312_v63, %v309_v62 }
 0x163   : > { %v623_v4 = vpop.eup %622  ;;  %v333_v5 = vmul.f32 %v621_v1, %v607_v43 }
 0x164   : > { %v625_v7 = vpop.eup %624  ;;  %v335_v9 = vmul.f32 0.6931472, %v623_v4  ;;  %v314_v10 = vsel %vm260_vm0, %v313_v3, 0.0  ;;  %v360_v17 = vsub.f32 %v809_v27, %v359_v2  ;;  %v269_v27 = vpop.xlane.xlu0 %268 }
 0x165   : > { %v627_v11 = vpop.eup %626  ;;  %315 = vadd.xlane.f32.xlu0 %v314_v10  ;;  %v342_v12 = vadd.f32 %v333_v5, %v309_v62  ;;  %v381_v14 = vmul.f32 %v625_v7, %v609_v44  ;;  %628 = vlog2.f32 %v269_v27 }
 0x166   : > { %v383_v15 = vmul.f32 0.6931472, %v627_v11  ;;  %v336_v16 = vsub.f32 %v812_v32, %v335_v9  ;;  %v361_v24 = vmul.f32 %v360_v17, %v357_v13 }
 0x167   : > { %v366_v18 = vadd.f32 %v357_v13, %v342_v12 }
 0x168   : > { %v337_v19 = vmul.f32 %v336_v16, %v333_v5  ;;  %v343_v20 = vadd.f32 %v336_v16, %v312_v63  ;;  %v384_v21 = vsub.f32 %v814_v33, %v383_v15  ;;  %v362_v28 = vsel %vm260_vm0, %v361_v24, 0.0 }
 0x169   : > { %v390_v22 = vadd.f32 %v381_v14, %v366_v18 }
 0x16a   : > { %v338_v23 = vsel %vm260_vm0, %v337_v19, 0.0  ;;  %v367_v25 = vadd.f32 %v360_v17, %v343_v20  ;;  %v385_v29 = vmul.f32 %v384_v21, %v381_v14 }
 0x16b   : > { %339 = vadd.xlane.f32.xlu0 %v338_v23 }
 0x16c   : > { %v391_v26 = vadd.f32 %v384_v21, %v367_v25  ;;  %v386_v31 = vsel %vm260_vm0, %v385_v29, 0.0 }
 0x16e   : > { %v403_v30 = vmul.f32 %v391_v26, %v390_v22 }
 0x16f   : > { %363 = vadd.xlane.f32.xlu0 %v362_v28  ;;  %v629_v32 = vpop.eup %628 }
 0x170   : > { %v271_v34 = vmul.f32 0.6931472, %v629_v32 }
 0x172   : > { %v272_v33 = vadd.f32 %v271_v34, %v818_v36  ;;  %v404_v36 = vmul.f32 %v545_v39, %v403_v30 }
 0x173   : > { %387 = vadd.xlane.f32.xlu0 %v386_v31 }
 0x174   : > { %v405_v51 = vsel %vm260_vm0, %v404_v36, 0.0 }
 0x1ea   : > { %v283_v35 = vpop.xlane.xlu1 %282 }
 0x1eb   : > { %v284_v37 = vsub.f32 %v272_v33, %v283_v35 }
 0x1ed   : > { %v285_v40 = vmul.f32 %v545_v39, %v284_v37 }
 0x1ef   : > { %v287_v41 = vsel %vm286_vm3, %v285_v40, 0.0 }
 0x1f0   : > { %288 = vadd.xlane.f32.xlu0 %v287_v41 }
 0x1f2   : > { %v316_v42 = vpop.xlane.xlu0 %315 }
 0x1f8   : > { %v340_v43 = vpop.xlane.xlu0 %339 }
 0x1f9   : > { %v341_v45 = vadd.f32 %v340_v43, %v316_v42 }
 0x1fc   : > { %v364_v44 = vpop.xlane.xlu0 %363 }
 0x1fd   : > { %v365_v46 = vadd.f32 %v364_v44, %v341_v45 }
 0x200   : > { %v388_v47 = vpop.xlane.xlu0 %387 }
 0x201   : > { %v389_v48 = vadd.f32 %v388_v47, %v365_v46 }
 0x203   : > { %v392_v49 = vmul.f32 %v545_v39, %v389_v48 }
 0x205   : > { %v393_v50 = vsel %vm286_vm3, %v392_v49, 0.0 }
 0x206   : > { %394 = vadd.xlane.f32.xlu0 %v393_v50 }
 0x20a   : > { %406 = vadd.xlane.f32.xlu0 %v405_v51 }
 0x27d   : > { %v289_v8 = vpop.xlane.xlu0 %288 }
 0x27e   : > { %v290_v52 = vrot.slane %v289_v8, 4 }
 0x280   : > { %v291_v54 = vadd.f32 %v290_v52, %v289_v8 }
 0x282   : > { %v292_v55 = vrot.slane %v291_v54, 2 }
 0x284   : > { %v293_v56 = vadd.f32 %v292_v55, %v291_v54 }
 0x286   : > { %v294_v57 = vrot.slane %v293_v56, 1 }
 0x288   : > { %v295_v58 = vadd.f32 %v294_v57, %v293_v56 }
 0x28a   : > { %553 = vpush %v295_v58 }
 0x293   : > { %v395_v59 = vpop.xlane.xlu0 %394 }
 0x294   : > { %v396_v60 = vrot.slane %v395_v59, 4 }
 0x296   : > { %v397_v61 = vadd.f32 %v396_v60, %v395_v59 }
 0x297   : > { %v407_v62 = vpop.xlane.xlu0 %406 }
 0x298   : > { %v398_v63 = vrot.slane %v397_v61, 2  ;;  %v408_v0 = vrot.slane %v407_v62, 4 }
 0x29a   : > { %v409_v1 = vadd.f32 %v408_v0, %v407_v62  ;;  %v399_v2 = vadd.f32 %v398_v63, %v397_v61 }
 0x29c   : > { %v410_v3 = vrot.slane %v409_v1, 2  ;;  %v400_v4 = vrot.slane %v399_v2, 1 }
 0x29e   : > { %v411_v5 = vadd.f32 %v410_v3, %v409_v1  ;;  %v401_v7 = vadd.f32 %v400_v4, %v399_v2 }
 0x2a0   : > { %555 = vpush %v401_v7  ;;  %v412_v9 = vrot.slane %v411_v5, 1 }
 0x2a2   : > { %v413_v10 = vadd.f32 %v412_v9, %v411_v5 }
 0x2a4   : > { %557 = vpush %v413_v10 }
 0x2bb   : > { %s554_s25 = spop %553 }
 0x2bc   : > { %v418_v11 = vstv %s554_s25 }
 0x2bd   : > { %v419_v14 = vsel %vm417_vm9, %v418_v11, 0.0 }
 0x2d1   : > { %s556_s27 = spop %555 }
 0x2d2   : > { %v422_v12 = vstv %s556_s27 }
 0x2d3   : > { %v423_v13 = vsel %vm421_vm7, %v422_v12, 0.0 }
 0x2d4   : > { %v424_v6 = vadd.f32 %v423_v13, %v419_v14 }
 0x2d5   : > { %s558_s29 = spop %557 }
 0x2d6   : > { %v427_v15 = vstv %s558_s29 }
 0x2d7   : > { %v428_v16 = vsel %vm426_vm10, %v427_v15, 0.0 }
 0x2d8   : > { %v429_v17 = vadd.f32 %v428_v16, %v424_v6 }
 0x2da   : > { %430 = vst [vmem:[%s240_s30] sm:$0xff] %v429_v17 }
 0x2db   : > { %643 = shalt.err (!%p640_p7)
}
 0x2dc   : > { %s644_s4 = scalar_lea.hbm %s856_s8, 128  ;;  %s648_s24 = scalar_lea.hbm %s902_s3, 384 }
 0x2dd   : > { %p645_p9 = scmp.ne.s32.totalorder %s856_s8, %s644_s4  ;;  %p649_p12 = scmp.lt.u32.totalorder %s856_s8, %s902_s3 }
 0x2de   : > { %p650_p13 = scmp.lt.u32.totalorder %s648_s24, %s644_s4  ;;  %p652_p1 = scmp.lt.u32.totalorder %s644_s4, %s856_s8 }
 0x2df   : > { %p646_p10 = pnand %p645_p9, %p756_p6 }
 0x2e0   : > { %p651_p0 = por %p650_p13, %p649_p12 }
 0x2e1   : > { %p647_p11 = pneg %p646_p10 }
 0x2e2   : > { %p653_p2 = por %p652_p1, %p651_p0 }
 0x2e4   : > { %p654_p3 = pnand %p653_p2, %p647_p11 }
 0x2e6   : > { %657 = shalt.err (!%p654_p3)
}
 0x2e7   : > { %559 = dma.vmem_to_hbm [thread:$0]  (%p756_p6), %s858_s5, 128, %s856_s8, %s432_s16  }
 0x2e8 PF: > { %p565_p4 = scmp.ge.s32.totalorder %s692_s15, 2  ;;  %s457_s27 = sand.u32 1, %s680_s12  }
 0x2e9   : > { %s458_s28 = scalar_lea.sflag [#allocation4], %s457_s27 }
 0x2ea   : > { %p562_p5 = pnand %p565_p4, %p760_p8 }
 0x2ec   : > { %675 = dma.done.wait (!%p562_p5), %s458_s28, 128  }
 0x2ed   : > { %677 = vsyncadd (!%p562_p5), %s458_s28, 4294967168  ;;  %p13_p7 = scmp.ge.s32.totalorder %s742_s18, 5   ;;  %s905_s12 = smov %s684_s13 }
 0x2ee   : > { %s906_s13 = smov %s688_s14  ;;  %s907_s14 = smov %s754_s21 }
 0x2ef   : > { %s908_s15 = smov %s742_s18  ;;  %15 = sbr.rel (!%p13_p7) target bundleno = 3 (0x3), region = 119 }
 0x2f6   :  { %463 = vsyncpa [#allocation4], 1 }
 0x2f7   :  { %465 = vsyncpa [#allocation4 + $0x1], 1 }

</bundles_post_ra>
